<compile_context>
chip_gen: v7x
topology: tpu7x:2x2x1
jax: 0.10.0
libtpu: 0.0.40
codegen_flags: <defaults>
</compile_context>

<pallas_src>
import functools

import jax
import jax.numpy as jnp
from jax import lax
from jax.experimental import pallas as pl
from jax.experimental.pallas import tpu as pltpu

LANE = 128
SUBLANE = 8


def _round_up(n, m):
    return (n + m - 1) // m * m


def encoder_kernel(x_ref, w1_ref, b1_ref, w23_ref, b23_ref, out_ref, *,
                   hidden_size):
    # --- fc1 + ReLU (f32 accumulation on the MXU, f32 elementwise) ----------
    h = jnp.dot(x_ref[...], w1_ref[...],
                preferred_element_type=jnp.float32) + b1_ref[...]
    h = jnp.maximum(h, 0.0)                                  # [tb, mid] f32

    # --- single fused MXU pass: columns [0:hidden) = fc2, [hidden] = fc3,
    #     remaining lane-padding columns are zero weights/bias --------------
    y = jnp.dot(h.astype(w23_ref.dtype), w23_ref[...],
                preferred_element_type=jnp.float32) + b23_ref[...]  # [tb, 128]

    col = lax.broadcasted_iota(jnp.int32, y.shape, dimension=1)
    m2 = col < hidden_size          # fc2 columns
    m3 = col == hidden_size         # fc3 column

    # L2 normalize fc2 columns: multiply by rsqrt (EUP) instead of sqrt+divide.
    sumsq = jnp.sum(jnp.where(m2, y * y, 0.0), axis=-1, keepdims=True)
    x2 = y * lax.rsqrt(sumsq)

    # Numerically-stable softplus (threshold=20, matches F.softplus) + 100.0
    sp = jnp.where(y > 20.0, y, jnp.log1p(jnp.exp(jnp.minimum(y, 20.0))))
    x3 = sp + 100.0

    # One lane-dense store of the whole [tb, 128] slab.
    out_ref[...] = jnp.where(m2, x2, jnp.where(m3, x3, 0.0)).astype(out_ref.dtype)


def prepare_params(w1, b1, w2, b2, w3, *, compute_dtype=jnp.float32):
    """One-time glue: transpose to [in, out], fuse fc2|fc3, pad lanes to 128.

    PyTorch layouts: w1 [mid, in], b1 [mid], w2 [hidden, mid], b2 [hidden],
    w3 [1, mid] (no bias)."""
    mid_size, input_size = w1.shape
    hidden_size = w2.shape[0]
    out_pad = _round_up(hidden_size + 1, LANE)

    w1t = w1.T.astype(compute_dtype)                         # [in, mid]
    b1_2d = b1.reshape(1, mid_size).astype(jnp.float32)      # [1, mid]

    w23 = jnp.zeros((mid_size, out_pad), compute_dtype)
    w23 = w23.at[:, :hidden_size].set(w2.T.astype(compute_dtype))
    w23 = w23.at[:, hidden_size:hidden_size + 1].set(w3.T.astype(compute_dtype))

    b23 = jnp.zeros((1, out_pad), jnp.float32)
    b23 = b23.at[:, :hidden_size].set(b2.astype(jnp.float32))

    return {
        "w1t": w1t, "b1": b1_2d, "w23": w23, "b23": b23,
        "input_size": input_size, "mid_size": mid_size,
        "hidden_size": hidden_size, "out_pad": out_pad,
    }


def encoder_forward(x, params, *, block_b=512):
    w1t, b1, w23, b23 = params["w1t"], params["b1"], params["w23"], params["b23"]
    input_size, mid_size = w1t.shape
    hidden_size = params["hidden_size"]
    out_pad = params["out_pad"]

    B = x.shape[0]
    x = x.astype(w1t.dtype)   # match matmul operand dtype (f32 or bf16)

    # Batch tile: multiple of 8 (sublane rule), as large as block_b; pad B up.
    tb = min(block_b, _round_up(B, SUBLANE))
    tb = max(SUBLANE, (tb // SUBLANE) * SUBLANE)
    B_pad = _round_up(B, tb)
    if B_pad != B:
        x = jnp.pad(x, ((0, B_pad - B), (0, 0)))

    grid = (B_pad // tb,)
    kernel = functools.partial(encoder_kernel, hidden_size=hidden_size)

    bytes_accessed = (
        x.size * x.dtype.itemsize
        + w1t.size * w1t.dtype.itemsize + b1.size * b1.dtype.itemsize
        + w23.size * w23.dtype.itemsize + b23.size * b23.dtype.itemsize
        + B_pad * out_pad * 4
    )
    cost = pl.CostEstimate(
        flops=2 * B_pad * (input_size * mid_size + mid_size * out_pad),
        transcendentals=B_pad * (out_pad + 1),
        bytes_accessed=bytes_accessed,
    )

    out = pl.pallas_call(
        kernel,
        out_shape=jax.ShapeDtypeStruct((B_pad, out_pad), jnp.float32),
        grid=grid,
        in_specs=[
            pl.BlockSpec((tb, input_size), lambda i: (i, 0)),       # x tile
            pl.BlockSpec((input_size, mid_size), lambda i: (0, 0)),  # w1t (resident)
            pl.BlockSpec((1, mid_size), lambda i: (0, 0)),           # b1
            pl.BlockSpec((mid_size, out_pad), lambda i: (0, 0)),     # fused w2|w3
            pl.BlockSpec((1, out_pad), lambda i: (0, 0)),            # fused b2|0
        ],
        out_specs=pl.BlockSpec((tb, out_pad), lambda i: (i, 0)),
        compiler_params=pltpu.CompilerParams(
            dimension_semantics=("parallel",)),
        cost_estimate=cost,
    )(x, w1t, b1, w23, b23)

    x2 = out[:B, :hidden_size]
    x3 = out[:B, hidden_size:hidden_size + 1]
    return x2, x3


def init_params(key, input_size, mid_size, hidden_size):
    """Deterministic init mimicking PyTorch's default Linear init."""
    k1, k2, k3, k4, k5 = jax.random.split(key, 5)
    lim1 = 1.0 / jnp.sqrt(input_size)
    lim2 = 1.0 / jnp.sqrt(mid_size)
    w1 = jax.random.uniform(k1, (mid_size, input_size), jnp.float32, -lim1, lim1)
    b1 = jax.random.uniform(k2, (mid_size,), jnp.float32, -lim1, lim1)
    w2 = jax.random.uniform(k3, (hidden_size, mid_size), jnp.float32, -lim2, lim2)
    b2 = jax.random.uniform(k4, (hidden_size,), jnp.float32, -lim2, lim2)
    w3 = jax.random.uniform(k5, (1, mid_size), jnp.float32, -lim2, lim2)
    return w1, b1, w2, b2, w3


def reference_forward(x, w1, b1, w2, b2, w3):
    h = jnp.maximum(x @ w1.T + b1, 0.0)
    y2 = h @ w2.T + b2
    x2 = y2 / jnp.linalg.norm(y2, axis=-1, keepdims=True)
    y3 = h @ w3.T
    x3 = jax.nn.softplus(y3) + 100.0
    return x2, x3


if __name__ == "__main__":
    B, input_size, mid_size, hidden_size = 8, 32, 64, 32

    key = jax.random.PRNGKey(0)
    kx, kp = jax.random.split(key)
    x = jax.random.normal(kx, (B, input_size), jnp.float32)
    w1, b1, w2, b2, w3 = init_params(kp, input_size, mid_size, hidden_size)

    # --- f32 path: exact semantics of the PyTorch module --------------------
    params_f32 = prepare_params(w1, b1, w2, b2, w3, compute_dtype=jnp.float32)
    x2, x3 = encoder_forward(x, params_f32)
    jax.block_until_ready((x2, x3))

    r2, r3 = reference_forward(x, w1, b1, w2, b2, w3)
    assert x2.shape == (B, hidden_size) and x3.shape == (B, 1)
    assert jnp.allclose(x2, r2, atol=1e-5, rtol=1e-5), "x2 mismatch"
    assert jnp.allclose(x3, r3, atol=1e-5, rtol=1e-5), "x3 mismatch"

    # --- bf16-matmul path (v6e/v7x MXU); elementwise math stays f32 ---------
    params_bf16 = prepare_params(w1, b1, w2, b2, w3, compute_dtype=jnp.bfloat16)
    x2b, x3b = encoder_forward(x, params_bf16)
    jax.block_until_ready((x2b, x3b))
    assert bool(jnp.all(jnp.isfinite(x2b))) and bool(jnp.all(jnp.isfinite(x3b)))

    print("KERNEL_OK")
</pallas_src>

<mosaic_0001>
module attributes {stable_mosaic.version = 11 : i64} {
  func.func @encoder_kernel(%arg0: i32, %arg1: memref<8x32xf32, #tpu.memory_space<vmem>>, %arg2: memref<32x64xf32, #tpu.memory_space<vmem>>, %arg3: memref<1x64xf32, #tpu.memory_space<vmem>>, %arg4: memref<64x128xf32, #tpu.memory_space<vmem>>, %arg5: memref<1x128xf32, #tpu.memory_space<vmem>>, %arg6: memref<8x128xf32, #tpu.memory_space<vmem>>) attributes {dimension_semantics = [#tpu.dimension_semantics<parallel>], iteration_bounds = array<i64: 1>, scalar_prefetch = 0 : i64, scratch_operands = 0 : i64, tpu.core_type = #tpu.core_type<tc>, window_params = [{transform_indices = @transform_0, window_bounds = array<i64: 8, 32>}, {pipeline_mode = #tpu.pipeline_mode<synchronous>, transform_indices = @transform_1, window_bounds = array<i64: 32, 64>}, {pipeline_mode = #tpu.pipeline_mode<synchronous>, transform_indices = @transform_2, window_bounds = array<i64: 1, 64>}, {pipeline_mode = #tpu.pipeline_mode<synchronous>, transform_indices = @transform_3, window_bounds = array<i64: 64, 128>}, {pipeline_mode = #tpu.pipeline_mode<synchronous>, transform_indices = @transform_4, window_bounds = array<i64: 1, 128>}, {transform_indices = @transform_5, window_bounds = array<i64: 8, 128>}]} {
    %c0 = arith.constant 0 : index
    %c0_0 = arith.constant 0 : index
    %0 = vector.load %arg1[%c0, %c0_0] : memref<8x32xf32, #tpu.memory_space<vmem>>, vector<8x32xf32>
    %c0_1 = arith.constant 0 : index
    %c0_2 = arith.constant 0 : index
    %1 = vector.load %arg2[%c0_1, %c0_2] : memref<32x64xf32, #tpu.memory_space<vmem>>, vector<32x64xf32>
    %cst = arith.constant dense<0.000000e+00> : vector<8x64xf32>
    %2 = tpu.matmul %0, %1, %cst {dimension_numbers = #tpu.dot_dimension_numbers<[1], [0], [0], [1], [0, 0, 1, 1], [], []>} : vector<8x32xf32>, vector<32x64xf32>, vector<8x64xf32> -> vector<8x64xf32>
    %c0_3 = arith.constant 0 : index
    %c0_4 = arith.constant 0 : index
    %3 = vector.load %arg3[%c0_3, %c0_4] : memref<1x64xf32, #tpu.memory_space<vmem>>, vector<1x64xf32>
    %4 = vector.broadcast %3 : vector<1x64xf32> to vector<8x64xf32>
    %5 = arith.addf %2, %4 : vector<8x64xf32>
    %cst_5 = arith.constant 0.000000e+00 : f32
    %6 = vector.broadcast %cst_5 : f32 to vector<8x64xf32>
    %7 = arith.maximumf %5, %6 : vector<8x64xf32>
    %c0_6 = arith.constant 0 : index
    %c0_7 = arith.constant 0 : index
    %8 = vector.load %arg4[%c0_6, %c0_7] : memref<64x128xf32, #tpu.memory_space<vmem>>, vector<64x128xf32>
    %cst_8 = arith.constant dense<0.000000e+00> : vector<8x128xf32>
    %9 = tpu.matmul %7, %8, %cst_8 {dimension_numbers = #tpu.dot_dimension_numbers<[1], [0], [0], [1], [0, 0, 1, 1], [], []>} : vector<8x64xf32>, vector<64x128xf32>, vector<8x128xf32> -> vector<8x128xf32>
    %c0_9 = arith.constant 0 : index
    %c0_10 = arith.constant 0 : index
    %10 = vector.load %arg5[%c0_9, %c0_10] : memref<1x128xf32, #tpu.memory_space<vmem>>, vector<1x128xf32>
    %11 = vector.broadcast %10 : vector<1x128xf32> to vector<8x128xf32>
    %12 = arith.addf %9, %11 : vector<8x128xf32>
    %13 = tpu.iota {dimensions = array<i32: 1>} : vector<8x128xi32>
    %c32_i32 = arith.constant 32 : i32
    %14 = vector.broadcast %c32_i32 : i32 to vector<8x128xi32>
    %15 = arith.cmpi slt, %13, %14 : vector<8x128xi32>
    %c32_i32_11 = arith.constant 32 : i32
    %16 = vector.broadcast %c32_i32_11 : i32 to vector<8x128xi32>
    %17 = arith.cmpi eq, %13, %16 : vector<8x128xi32>
    %18 = arith.mulf %12, %12 : vector<8x128xf32>
    %cst_12 = arith.constant 0.000000e+00 : f32
    %19 = vector.broadcast %cst_12 : f32 to vector<8x128xf32>
    %20 = arith.select %15, %18, %19 : vector<8x128xi1>, vector<8x128xf32>
    %cst_13 = arith.constant dense<0.000000e+00> : vector<8xf32>
    %21 = vector.multi_reduction <add>, %20, %cst_13 [1] : vector<8x128xf32> to vector<8xf32>
    %22 = vector.shape_cast %21 : vector<8xf32> to vector<8x1xf32>
    %23 = math.rsqrt %22 : vector<8x1xf32>
    %24 = vector.broadcast %23 : vector<8x1xf32> to vector<8x128xf32>
    %25 = arith.mulf %12, %24 : vector<8x128xf32>
    %cst_14 = arith.constant 2.000000e+01 : f32
    %26 = vector.broadcast %cst_14 : f32 to vector<8x128xf32>
    %27 = arith.cmpf ogt, %12, %26 : vector<8x128xf32>
    %cst_15 = arith.constant 2.000000e+01 : f32
    %28 = vector.broadcast %cst_15 : f32 to vector<8x128xf32>
    %29 = arith.minimumf %12, %28 : vector<8x128xf32>
    %30 = math.exp %29 : vector<8x128xf32>
    %31 = math.log1p %30 : vector<8x128xf32>
    %32 = arith.select %27, %12, %31 : vector<8x128xi1>, vector<8x128xf32>
    %cst_16 = arith.constant 1.000000e+02 : f32
    %33 = vector.broadcast %cst_16 : f32 to vector<8x128xf32>
    %34 = arith.addf %32, %33 : vector<8x128xf32>
    %cst_17 = arith.constant 0.000000e+00 : f32
    %35 = vector.broadcast %cst_17 : f32 to vector<8x128xf32>
    %36 = arith.select %17, %34, %35 : vector<8x128xi1>, vector<8x128xf32>
    %37 = arith.select %15, %25, %36 : vector<8x128xi1>, vector<8x128xf32>
    %c0_18 = arith.constant 0 : index
    %c0_19 = arith.constant 0 : index
    %38 = vector.load %arg6[%c0_18, %c0_19] : memref<8x128xf32, #tpu.memory_space<vmem>>, vector<8x128xf32>
    tpu.vector_store %arg6[%c0_18, %c0_19], %37 {strides = array<i32>} : memref<8x128xf32, #tpu.memory_space<vmem>>, vector<8x128xf32>,
    return
  }
  func.func @transform_0(%arg0: i32) -> (i32, i32) {
    %c0_i32 = arith.constant 0 : i32
    %c0_i32_0 = arith.constant 0 : i32
    return %arg0, %c0_i32 : i32, i32
  }
  func.func @transform_1(%arg0: i32) -> (i32, i32) {
    %c0_i32 = arith.constant 0 : i32
    %c0_i32_0 = arith.constant 0 : i32
    %c0_i32_1 = arith.constant 0 : i32
    return %c0_i32, %c0_i32_0 : i32, i32
  }
  func.func @transform_2(%arg0: i32) -> (i32, i32) {
    %c0_i32 = arith.constant 0 : i32
    %c0_i32_0 = arith.constant 0 : i32
    %c0_i32_1 = arith.constant 0 : i32
    return %c0_i32, %c0_i32_0 : i32, i32
  }
  func.func @transform_3(%arg0: i32) -> (i32, i32) {
    %c0_i32 = arith.constant 0 : i32
    %c0_i32_0 = arith.constant 0 : i32
    %c0_i32_1 = arith.constant 0 : i32
    return %c0_i32, %c0_i32_0 : i32, i32
  }
  func.func @transform_4(%arg0: i32) -> (i32, i32) {
    %c0_i32 = arith.constant 0 : i32
    %c0_i32_0 = arith.constant 0 : i32
    %c0_i32_1 = arith.constant 0 : i32
    return %c0_i32, %c0_i32_0 : i32, i32
  }
  func.func @transform_5(%arg0: i32) -> (i32, i32) {
    %c0_i32 = arith.constant 0 : i32
    %c0_i32_0 = arith.constant 0 : i32
    return %arg0, %c0_i32 : i32, i32
  }
}

</mosaic_0001>

<bundles_post_ra>
// kernel: tpu_custom_call.1
= control target key start
LH: loop header
LB: loop body
LE: loop exit
PB: predicated region body
PF: predicated region fallthrough
CT: control target
= control target key end

     0   :  { %10 = vsyncpa [#allocation3], 0  ;;  %s556_s0 = inlined_call_operand.hbm [shape: f32[8,32], index: 0, kind: input, shape index: {}]   ;;  %s557_s1 = inlined_call_operand.hbm [shape: f32[32,64], index: 1, kind: input, shape index: {}]   ;;  %s558_s2 = inlined_call_operand.vmem [shape: f32[1,64], index: 2, kind: input, shape index: {}]   ;;  %s559_s3 = inlined_call_operand.hbm [shape: f32[64,128], index: 3, kind: input, shape index: {}]   ;;  %s560_s4 = inlined_call_operand.vmem [shape: f32[1,128], index: 4, kind: input, shape index: {}]   ;;  %s561_s5 = inlined_call_operand.hbm [shape: f32[8,128], index: 5, kind: output, shape index: {}]  }
   0x1   :  { %11 = vsyncpa [#allocation6], 0 }
   0x2   :  { %12 = vsyncpa [#allocation4], 0  ;;  %s455_s18 = smov [#allocation5]   ;;  %s361_s22 = scalar_lea.hbm %s557_s1, 512 }
   0x3   :  { %s28_s19 = sshll.u32 %s455_s18, 4  ;;  %p362_p0 = scmp.ne.s32.totalorder %s557_s1, %s361_s22  ;;  %s29_s19 = int_to_ptr.vmem [resolvable:$true] %s28_s19 }
   0x4   :  { %p365_p1 = scmp.lt.u32.totalorder %s361_s22, %s557_s1 }
   0x6   :  { %p367_p2 = pnand %p365_p1, %p362_p0 }
   0x8   :  { %370 = shalt.err (!%p367_p2)
}
   0x9   :  { %s371_s27 = scalar_lea.vmem %s29_s19, 512  ;;  %p376_p4 = scmp.lt.s32.totalorder %s29_s19, %s29_s19 }
   0xa   :  { %p372_p3 = scmp.ne.s32.totalorder %s29_s19, %s371_s27  ;;  %p377_p5 = scmp.lt.s32.totalorder %s371_s27, %s371_s27 }
   0xc   :  { %p378_p6 = por %p377_p5, %p376_p4 }
   0xe   :  { %p379_p7 = pnand %p378_p6, %p372_p3 }
  0x10   :  { %382 = shalt.err (!%p379_p7)
}
  0x11   :  { %s456_s28 = smov 128   ;;  %s457_s29 = smov 8  }
  0x12   :  { %34 = dma.hbm_to_vmem [thread:$0]  %s557_s1, 512, %s29_s19, [#allocation6], %s456_s28, %s456_s28, %s457_s29  }
  0x13   :  { %s458_s7 = smov [#allocation2]   ;;  %s459_s9 = smov [#allocation7]  }
  0x14   :  { %s19_s8 = sshll.u32 %s458_s7, 4  ;;  %s42_s10 = sshll.u32 %s459_s9, 4  ;;  %s20_s8 = int_to_ptr.vmem [resolvable:$true] %s19_s8  ;;  %s43_s10 = int_to_ptr.vmem [resolvable:$true] %s42_s10 }
  0x15   :  { %s383_s13 = scalar_lea.hbm %s556_s0, 128 }
  0x16   :  { %p384_p8 = scmp.ne.s32.totalorder %s556_s0, %s383_s13  ;;  %p387_p9 = scmp.lt.u32.totalorder %s383_s13, %s556_s0 }
  0x18   :  { %p389_p10 = pnand %p387_p9, %p384_p8 }
  0x1a   :  { %392 = shalt.err (!%p389_p10)
}
  0x1b   :  { %s393_s1 = scalar_lea.vmem %s20_s8, 128  ;;  %p398_p12 = scmp.lt.s32.totalorder %s20_s8, %s20_s8 }
  0x1c   :  { %p394_p11 = scmp.ne.s32.totalorder %s20_s8, %s393_s1  ;;  %p399_p13 = scmp.lt.s32.totalorder %s393_s1, %s393_s1 }
  0x1e   :  { %p400_p0 = por %p399_p13, %p398_p12 }
  0x20   :  { %p401_p1 = pnand %p400_p0, %p394_p11 }
  0x22   :  { %404 = shalt.err (!%p401_p1)
}
  0x23   :  { %22 = dma.hbm_to_vmem [thread:$0]  %s556_s0, 128, %s20_s8, [#allocation3]  }
  0x24   :  { %s405_s22 = scalar_lea.hbm %s559_s3, 1024 }
  0x25   :  { %p406_p2 = scmp.ne.s32.totalorder %s559_s3, %s405_s22  ;;  %p409_p3 = scmp.lt.u32.totalorder %s405_s22, %s559_s3 }
  0x27   :  { %p411_p4 = pnand %p409_p3, %p406_p2 }
  0x29   :  { %414 = shalt.err (!%p411_p4)
}
  0x2a   :  { %s415_s27 = scalar_lea.vmem %s43_s10, 1024  ;;  %p420_p6 = scmp.lt.s32.totalorder %s43_s10, %s43_s10 }
  0x2b   :  { %p416_p5 = scmp.ne.s32.totalorder %s43_s10, %s415_s27  ;;  %p421_p7 = scmp.lt.s32.totalorder %s415_s27, %s415_s27 }
  0x2d   :  { %p422_p8 = por %p421_p7, %p420_p6 }
  0x2f   :  { %p423_p9 = pnand %p422_p8, %p416_p5 }
  0x31   :  { %426 = shalt.err (!%p423_p9)
}
  0x32   :  { %48 = dma.hbm_to_vmem [thread:$0]  %s559_s3, 1024, %s43_s10, [#allocation6], %s456_s28, %s456_s28, %s457_s29  }
  0x33   :  { %449 = dma.done.wait [#allocation3], 128  }
  0x34   :  { %450 = vsyncadd [#allocation3], 4294967168 }
  0x35   :  { %451 = dma.done.wait [#allocation6], 1536  }
  0x36   :  { %452 = vsyncadd [#allocation6], 4294965760  ;;  %v460_v0 = vmov 0.0|0.0   ;;  %vm461_vm0 = vmmov 0   ;;  %v462_v1 = vmov 0.0   ;;  %v61_v2 = vld [vmem:[#allocation5] sm:$0xff]  ;;  %v236_v26 = vlaneseq }
  0x37   :  { %328 = vmatprep.subr.bf16.mxu0 %v460_v0  ;;  %306 = vmatprep.mubr.msk.f32.mxu0 %vm461_vm0, %v462_v1  ;;  %v62_v3 = vld [vmem:[#allocation5 + $0x8] sm:$0xff]  ;;  %v63_v4 = vld [vmem:[#allocation5 + $0x10] sm:$0xff]  ;;  %v64_v6 = vld [vmem:[#allocation5 + $0x18] sm:$0xff]  ;;  %vm72_vm1 = vcmask 261120   ;;  %vm162_vm2 = vcmask 523264  }
  0x38   :  { %334 = vmatprep.subr.bf16.mxu1 %v460_v0  ;;  %325 = vmatprep.mubr.msk.f32.mxu1 %vm461_vm0, %v462_v1  ;;  %v329_v5 = vpack.c.bf16 %v62_v3, %v61_v2  ;;  %v147_v7 = vld [vmem:[#allocation7] sm:$0xff]  ;;  %v148_v8 = vld [vmem:[#allocation7 + $0x8] sm:$0xff]  ;;  %v149_v9 = vld [vmem:[#allocation7 + $0x10] sm:$0xff]  ;;  %v332_v11 = vpack.c.bf16 %v64_v6, %v63_v4  ;;  %v237_v28 = vand.u32 127, %v236_v26 }
  0x39   :  { %v150_v10 = vld [vmem:[#allocation7 + $0x18] sm:$0xff]  ;;  %v335_v12 = vpack.c.bf16 %v148_v8, %v147_v7  ;;  %v151_v14 = vld [vmem:[#allocation7 + $0x20] sm:$0xff]  ;;  %v152_v15 = vld [vmem:[#allocation7 + $0x28] sm:$0xff] }
  0x3a   :  { %330 = vmatpush3.bf16.msra.mxu0 %v329_v5  ;;  %v338_v13 = vpack.c.bf16 %v150_v10, %v149_v9  ;;  %v60_v16 = vld [vmem:[#allocation2] sm:$0xff]  ;;  %v341_v17 = vpack.c.bf16 %v152_v15, %v151_v14  ;;  %v153_v18 = vld [vmem:[#allocation7 + $0x30] sm:$0xff]  ;;  %vm238_vm3 = vcmp.lt.s32.totalorder %v237_v28, 32  ;;  %vm239_vm6 = vcmp.eq.s32.totalorder %v237_v28, 32 }
  0x3b   :  { %331 = vmatprep.subr.bf16.mxu0 %v460_v0  ;;  %336 = vmatpush3.bf16.msra.mxu1 %v335_v12  ;;  %v154_v19 = vld [vmem:[#allocation7 + $0x38] sm:$0xff] }
  0x3c   :  { %337 = vmatprep.subr.bf16.mxu1 %v460_v0  ;;  %v344_v20 = vpack.c.bf16 %v154_v19, %v153_v18  ;;  %v280_v21 = vld [vmem:[%s558_s2] ss:$0 sm:$0xff]  ;;  %s463_s2 = smov [#allocation8]  }
  0x3d   :  { %v282_v27 = vld [vmem:[%s560_s4] ss:$0 sm:$0xff]  ;;  %s270_s4 = sshll.u32 %s463_s2, 4  ;;  %s271_s4 = int_to_ptr.vmem [resolvable:$true] %s270_s4 }
  0x3e   :  { %333 = vmatpush3.bf16.msra.mxu0 %v332_v11  ;;  %s427_s7 = scalar_lea.vmem %s271_s4, 128  ;;  %p432_p11 = scmp.lt.s32.totalorder %s271_s4, %s271_s4 }
  0x3f   :  { %339 = vmatpush3.bf16.msra.mxu1 %v338_v13  ;;  %p428_p10 = scmp.ne.s32.totalorder %s271_s4, %s427_s7  ;;  %p433_p12 = scmp.lt.s32.totalorder %s427_s7, %s427_s7 }
  0x40   :  { %340 = vmatprep.subr.bf16.mxu1 %v460_v0 }
  0x41   :  { %307 = vmatmul.mubr.msk.f32.vlgmr.msra.gmra.mrb[0].mxu0 %vm72_vm1, %v60_v16  ;;  %p434_p13 = por %p433_p12, %p432_p11 }
  0x43   :  { %342 = vmatpush3.bf16.msra.mxu1 %v341_v17  ;;  %p435_p0 = pnand %p434_p13, %p428_p10 }
  0x44   :  { %343 = vmatprep.subr.bf16.mxu1 %v460_v0 }
  0x47   :  { %345 = vmatpush3.bf16.msra.mxu1 %v344_v20 }
 0x114   :  { %v142_v22 = vpop.f32.mrb[0].mxu0 }
 0x115   :  { %v143_v23 = vadd.f32 %v280_v21, %v142_v22  ;;  %v308_v24 = vpop.f32.mrb[1].mxu0 }
 0x117   :  { %v146_v25 = vmax.f32 %v143_v23, 0.0 }
 0x119   :  { %326 = vmatmul.mubr.msk.f32.vlgmr.msra.gmra.mrb[0].mxu1 %vm162_vm2, %v146_v25 }
 0x1ec   :  { %v232_v29 = vpop.f32.mrb[0].mxu1 }
 0x1ed   :  { %v233_v30 = vadd.f32 %v282_v27, %v232_v29  ;;  %v327_v31 = vpop.f32.mrb[1].mxu1 }
 0x1ef   :  { %v240_v32 = vmul.f32 %v233_v30, %v233_v30  ;;  %v247_v34 = vmin.f32 %v233_v30, 20.0  ;;  %vm246_vm5 = vcmp.gt.f32.partialorder %v233_v30, 20.0 }
 0x1f1   :  { %v241_v33 = vsel %vm238_vm3, %v240_v32, 0.0  ;;  %v248_v35 = vmul.f32 1.442695, %v247_v34 }
 0x1f2   :  { %242 = vadd.xlane.f32.xlu0 %v241_v33 }
 0x1f3   :  { %355 = vpow2.f32 %v248_v35 }
 0x1fd   :  { %v356_v36 = vpop.eup %355 }
 0x1fe   :  { %v250_v37 = vadd.f32 1.0, %v356_v36  ;;  %v253_v38 = vmul.f32 -0.5, %v356_v36  ;;  %v256_v41 = vand.u32 2147483647, %v356_v36 }
 0x200   :  { %357 = vlog2.f32 %v250_v37  ;;  %v254_v40 = vadd.f32 1.0, %v253_v38  ;;  %vm257_vm4 = vcmp.lt.f32.partialorder %v256_v41, 0.0004427343 }
 0x202   :  { %v255_v44 = vmul.f32 %v356_v36, %v254_v40 }
 0x20a   :  { %v358_v39 = vpop.eup %357 }
 0x20b   :  { %v252_v42 = vmul.f32 0.6931472, %v358_v39 }
 0x20d   :  { %v258_v45 = vsel %vm257_vm4, %v255_v44, %v252_v42 }
 0x20e   :  { %v259_v46 = vsel %vm246_vm5, %v233_v30, %v258_v45 }
 0x20f   :  { %v260_v47 = vadd.f32 100.0, %v259_v46 }
 0x211   :  { %v261_v50 = vsel %vm239_vm6, %v260_v47, 0.0 }
 0x27f   :  { %v243_v43 = vpop.xlane.xlu0 %242 }
 0x280   :  { %359 = vrsqrt.f32 %v243_v43 }
 0x28a   :  { %v360_v48 = vpop.eup %359 }
 0x28b   :  { %v245_v49 = vmul.f32 %v360_v48, %v233_v30 }
 0x28d   :  { %v262_v51 = vsel %vm238_vm3, %v245_v49, %v261_v50 }
 0x28e   :  { %263 = vst [vmem:[#allocation8] sm:$0xff] %v262_v51 }
 0x28f   :  { %438 = shalt.err (!%p435_p0)
}
 0x290   :  { %s439_s10 = scalar_lea.hbm %s561_s5, 128 }
 0x291   :  { %p440_p1 = scmp.ne.s32.totalorder %s561_s5, %s439_s10  ;;  %p443_p2 = scmp.lt.u32.totalorder %s439_s10, %s561_s5 }
 0x293   :  { %p445_p3 = pnand %p443_p2, %p440_p1 }
 0x295   :  { %448 = shalt.err (!%p445_p3)
}
 0x296   :  { %273 = dma.vmem_to_hbm [thread:$0]  %s271_s4, 128, %s561_s5, [#allocation4]  }
 0x297   :  { %453 = dma.done.wait [#allocation4], 128  }
 0x298   :  { %454 = vsyncadd [#allocation4], 4294967168 }
 0x299   :  { %277 = vsyncpa [#allocation3], 1 }
 0x29a   :  { %278 = vsyncpa [#allocation6], 1 }
 0x29b   :  { %279 = vsyncpa [#allocation4], 1 }

</bundles_post_ra>
